<compile_context>
chip_gen: v5e
topology: v5e:2x2
jax: 0.10.0
libtpu: 0.0.40
codegen_flags: <defaults>
</compile_context>

<pallas_src>
import numpy as np

import jax
import jax.numpy as jnp
from jax import lax
from jax.experimental import pallas as pl
from jax.experimental.pallas import tpu as pltpu


def _round_up(n, m):
    return (n + m - 1) // m * m


# ---------------------------------------------------------------------------
# Single fused Pallas kernel: entire forward pass, VMEM-resident.
# ---------------------------------------------------------------------------
def _fused_forward_kernel(x_ref, t1_ref, b1_ref, t2_ref, b2_ref,
                          w3_ref, b3_ref, w4_ref, b4_ref, o_ref):
    f32 = jnp.float32
    mxu_dtype = t1_ref.dtype                     # bf16 fast path / f32 exact path
    x = x_ref[...].astype(mxu_dtype)             # (TM, 64)

    # conv1 + bias + relu + 2x2 maxpool.
    # Column layout of t1: corner k in [k*256, (k+1)*256).  Chunked dots with a
    # running max keep the live f32 temp at (TM, 256) instead of (TM, 1024).
    # (relu(max(z)+b) == maxpool(relu(conv+b)): bias identical across corners,
    #  relu monotone.)
    z = jnp.dot(x, t1_ref[:, 0:256], preferred_element_type=f32)
    for c in range(1, 4):
        z = jnp.maximum(z, jnp.dot(x, t1_ref[:, 256 * c:256 * (c + 1)],
                                   preferred_element_type=f32))
    a1 = jnp.maximum(z + b1_ref[...], 0.0).astype(mxu_dtype)        # (TM, 256)

    # conv2 + bias + relu + 2x2 maxpool.  t2 columns: corner k in
    # [k*128, (k+1)*128), sub-ordered as PyTorch NCHW view(-1, 64) (c*4+y*2+x).
    # Two 256-lane chunks keep the MXU full; corner-max over 128-lane halves.
    z01 = jnp.dot(a1, t2_ref[:, 0:256], preferred_element_type=f32)
    z23 = jnp.dot(a1, t2_ref[:, 256:512], preferred_element_type=f32)
    z = jnp.maximum(jnp.maximum(z01[:, 0:128], z01[:, 128:256]),
                    jnp.maximum(z23[:, 0:128], z23[:, 128:256]))
    a2 = jnp.maximum(z + b2_ref[...], 0.0).astype(mxu_dtype)        # (TM, 128)

    # fc1 (+relu) applied to BOTH view(-1, 64) rows of each sample at once via
    # a block-diagonal weight; fc2 likewise, padded to 128 output lanes so the
    # store is a full-width unmasked vst.
    h = jnp.maximum(jnp.dot(a2, w3_ref[...], preferred_element_type=f32)
                    + b3_ref[...], 0.0).astype(mxu_dtype)           # (TM, 256)
    o_ref[...] = (jnp.dot(h, w4_ref[...], preferred_element_type=f32)
                  + b4_ref[...]).astype(o_ref.dtype)                # (TM, 128)


def _fused_pallas_call(x2d, fp):
    """x2d: (N, 64) flattened 8x8 single-channel images, N % 8 == 0.

    Returns (N, 128) padded logits (cols 0..9 / 10..19 are the two
    view(-1, 64) rows of each sample).
    """
    N = x2d.shape[0]
    # Row tile: >=2 grid steps whenever the batch allows it (v7x megacore),
    # capped at 512 rows to stay inside v5e's 16 MiB default scoped VMEM.
    # (On v6e this can be swept to 1024 together with vmem_limit_bytes.)
    TM = N if N <= 8 else min(512, _round_up(pl.cdiv(N, 2), 8))
    grid = (pl.cdiv(N, TM),)
    vmem = pltpu.MemorySpace.VMEM

    flops = 2 * N * (64 * 1024 + 256 * 512 + 128 * 256 + 256 * 128)
    bytes_accessed = (
        4 * (x2d.size + N * 128
             + fp["b1"].size + fp["b2"].size + fp["b3"].size + fp["b4"].size)
        + fp["t1"].dtype.itemsize * (fp["t1"].size + fp["t2"].size
                                     + fp["w3"].size + fp["w4"].size))

    return pl.pallas_call(
        _fused_forward_kernel,
        out_shape=jax.ShapeDtypeStruct((N, 128), jnp.float32),
        grid=grid,
        in_specs=[
            pl.BlockSpec((TM, 64),    lambda i: (i, 0), memory_space=vmem),  # x
            pl.BlockSpec((64, 1024),  lambda i: (0, 0), memory_space=vmem),  # t1
            pl.BlockSpec((1, 256),    lambda i: (0, 0), memory_space=vmem),  # b1
            pl.BlockSpec((256, 512),  lambda i: (0, 0), memory_space=vmem),  # t2
            pl.BlockSpec((1, 128),    lambda i: (0, 0), memory_space=vmem),  # b2
            pl.BlockSpec((128, 256),  lambda i: (0, 0), memory_space=vmem),  # w3
            pl.BlockSpec((1, 256),    lambda i: (0, 0), memory_space=vmem),  # b3
            pl.BlockSpec((256, 128),  lambda i: (0, 0), memory_space=vmem),  # w4
            pl.BlockSpec((1, 128),    lambda i: (0, 0), memory_space=vmem),  # b4
        ],
        out_specs=pl.BlockSpec((TM, 128), lambda i: (i, 0), memory_space=vmem),
        compiler_params=pltpu.CompilerParams(
            dimension_semantics=("parallel",)),
        cost_estimate=pl.CostEstimate(flops=flops, transcendentals=0,
                                      bytes_accessed=int(bytes_accessed)),
    )(x2d, fp["t1"], fp["b1"], fp["t2"], fp["b2"],
      fp["w3"], fp["b3"], fp["w4"], fp["b4"])


@jax.jit
def simple_model_forward(x_nchw, fused_params):
    """Matches PyTorch SimpleModel.forward for (N, 1, 8, 8) inputs."""
    N, C, H, W = x_nchw.shape
    assert (C, H, W) == (1, 8, 8), "fused weights are built for 1x8x8 inputs"
    x2d = x_nchw.reshape(N, 64)                   # C=1 -> no transpose needed
    n_pad = _round_up(max(N, 8), 8)               # full (8, 128) sublane tiles
    if n_pad != N:
        x2d = jnp.pad(x2d, ((0, n_pad - N), (0, 0)))
    out = _fused_pallas_call(x2d, fused_params)[:N]   # (N, 128) padded logits
    # cols 0..9 = logits of flatten-row 2n, cols 10..19 = flatten-row 2n+1
    return out[:, :20].reshape(2 * N, 10)


# ---------------------------------------------------------------------------
# One-time host-side weight folding (conv+pool -> dense matmul matrices).
# ---------------------------------------------------------------------------
def build_fused_params(params, weights_dtype=jnp.bfloat16):
    w1 = np.asarray(params["w1"], np.float32)    # (16, 1, 3, 3)
    b1 = np.asarray(params["b1"], np.float32)    # (16,)
    w2 = np.asarray(params["w2"], np.float32)    # (32, 16, 3, 3)
    b2 = np.asarray(params["b2"], np.float32)    # (32,)
    wfc1 = np.asarray(params["wfc1"], np.float32)  # (128, 64)
    bfc1 = np.asarray(params["bfc1"], np.float32)  # (128,)
    wfc2 = np.asarray(params["wfc2"], np.float32)  # (10, 128)
    bfc2 = np.asarray(params["bfc2"], np.float32)  # (10,)

    # Stage 1: conv1 (pad=1) evaluated at each of the 4 corners of every 2x2
    # pool window of the 8x8 map.  Column layout: k*256 + (Y1*4+X1)*16 + o.
    T1 = np.zeros((64, 4 * 256), np.float32)
    for k in range(4):
        ky, kx = divmod(k, 2)
        for Y1 in range(4):
            for X1 in range(4):
                oy, ox = 2 * Y1 + ky, 2 * X1 + kx
                col0 = k * 256 + (Y1 * 4 + X1) * 16
                for dy in range(3):
                    for dx in range(3):
                        iy, ix = oy + dy - 1, ox + dx - 1
                        if 0 <= iy < 8 and 0 <= ix < 8:
                            T1[iy * 8 + ix, col0:col0 + 16] += w1[:, 0, dy, dx]
    B1 = np.tile(b1, 16)                                    # col = q1*16 + o

    # Stage 2: conv2 (pad=1) on the pooled 4x4x16 map, evaluated at the corners
    # of the 2x2 pool windows.  Output columns in PyTorch NCHW flatten order:
    # k*128 + (o*4 + Y2*2 + X2).
    T2 = np.zeros((256, 4 * 128), np.float32)
    for k in range(4):
        ky, kx = divmod(k, 2)
        for Y2 in range(2):
            for X2 in range(2):
                oy, ox = 2 * Y2 + ky, 2 * X2 + kx
                q2 = Y2 * 2 + X2
                cols = k * 128 + np.arange(32) * 4 + q2
                for dy in range(3):
                    for dx in range(3):
                        iy, ix = oy + dy - 1, ox + dx - 1
                        if 0 <= iy < 4 and 0 <= ix < 4:
                            rows = (iy * 4 + ix) * 16 + np.arange(16)
                            T2[np.ix_(rows, cols)] += w2[:, :, dy, dx].T
    B2 = np.repeat(b2, 4)                                   # col = o*4 + q2

    # Stage 3/4: fc1/fc2 applied to both view(-1,64) rows of a sample at once
    # (block-diagonal weights); fc2 output padded to 128 lanes.
    W3 = np.zeros((128, 256), np.float32)
    W3[:64, :128] = wfc1.T
    W3[64:, 128:] = wfc1.T
    B3 = np.concatenate([bfc1, bfc1])
    W4 = np.zeros((256, 128), np.float32)
    W4[:128, :10] = wfc2.T
    W4[128:, 10:20] = wfc2.T
    B4 = np.zeros((128,), np.float32)
    B4[:10] = bfc2
    B4[10:20] = bfc2

    # Matmul operands in the requested MXU dtype; biases stay f32 (VPU epilogue).
    return {
        "t1": jnp.asarray(T1, weights_dtype), "b1": jnp.asarray(B1.reshape(1, 256)),
        "t2": jnp.asarray(T2, weights_dtype), "b2": jnp.asarray(B2.reshape(1, 128)),
        "w3": jnp.asarray(W3, weights_dtype), "b3": jnp.asarray(B3.reshape(1, 256)),
        "w4": jnp.asarray(W4, weights_dtype), "b4": jnp.asarray(B4.reshape(1, 128)),
    }


# ---------------------------------------------------------------------------
# Pure-JAX reference (self-check only).
# ---------------------------------------------------------------------------
def reference_forward(x_nchw, params):
    def conv(x, w, b):
        y = lax.conv_general_dilated(
            x, w, window_strides=(1, 1), padding="SAME",
            dimension_numbers=("NCHW", "OIHW", "NCHW"))
        return jax.nn.relu(y + b[None, :, None, None])

    def pool(x):
        return lax.reduce_window(x, -jnp.inf, lax.max,
                                 (1, 1, 2, 2), (1, 1, 2, 2), "VALID")

    x = pool(conv(x_nchw, params["w1"], params["b1"]))
    x = pool(conv(x, params["w2"], params["b2"]))
    x = x.reshape(-1, 64)
    x = jax.nn.relu(x @ params["wfc1"].T + params["bfc1"])
    return x @ params["wfc2"].T + params["bfc2"]


def init_params(key):
    ks = jax.random.split(key, 8)
    scale = lambda fan_in: 1.0 / jnp.sqrt(jnp.float32(fan_in))
    return {
        "w1": jax.random.normal(ks[0], (16, 1, 3, 3), jnp.float32) * scale(9),
        "b1": jax.random.normal(ks[1], (16,), jnp.float32) * scale(9),
        "w2": jax.random.normal(ks[2], (32, 16, 3, 3), jnp.float32) * scale(144),
        "b2": jax.random.normal(ks[3], (32,), jnp.float32) * scale(144),
        "wfc1": jax.random.normal(ks[4], (128, 64), jnp.float32) * scale(64),
        "bfc1": jax.random.normal(ks[5], (128,), jnp.float32) * scale(64),
        "wfc2": jax.random.normal(ks[6], (10, 128), jnp.float32) * scale(128),
        "bfc2": jax.random.normal(ks[7], (10,), jnp.float32) * scale(128),
    }


if __name__ == "__main__":
    key = jax.random.PRNGKey(0)
    kx, kp = jax.random.split(key)
    params = init_params(kp)

    # Input 8x8 so that view(-1, 64) is valid: (2,1,8,8) -> 4 flatten rows.
    x = jax.random.normal(kx, (2, 1, 8, 8), jnp.float32)
    ref = reference_forward(x, params)

    # 1) Exactness path (f32 MXU operands): validates the conv/pool/flatten
    #    fold against the reference to 1e-4.
    fused_f32 = build_fused_params(params, weights_dtype=jnp.float32)
    out_f32 = jax.block_until_ready(simple_model_forward(x, fused_f32))
    assert out_f32.shape == (4, 10), out_f32.shape
    assert jnp.allclose(out_f32, ref, atol=1e-4, rtol=1e-4), "f32 path mismatch"

    # 2) Fast path (bf16 MXU operands, f32 accumulation): the production
    #    configuration; bf16 carries ~3 decimal digits, so tolerance is
    #    deliberately loosened for this check.
    fused_bf16 = build_fused_params(params, weights_dtype=jnp.bfloat16)
    out_bf16 = jax.block_until_ready(simple_model_forward(x, fused_bf16))
    assert out_bf16.shape == (4, 10), out_bf16.shape
    assert jnp.allclose(out_bf16, ref, atol=5e-2, rtol=5e-2), "bf16 path mismatch"

    print("KERNEL_OK")
</pallas_src>

<mosaic_0001>
module attributes {stable_mosaic.version = 11 : i64} {
  func.func @_fused_forward_kernel(%arg0: i32, %arg1: memref<8x64xf32, #tpu.memory_space<vmem>>, %arg2: memref<64x1024xf32, #tpu.memory_space<vmem>>, %arg3: memref<1x256xf32, #tpu.memory_space<vmem>>, %arg4: memref<256x512xf32, #tpu.memory_space<vmem>>, %arg5: memref<1x128xf32, #tpu.memory_space<vmem>>, %arg6: memref<128x256xf32, #tpu.memory_space<vmem>>, %arg7: memref<1x256xf32, #tpu.memory_space<vmem>>, %arg8: memref<256x128xf32, #tpu.memory_space<vmem>>, %arg9: memref<1x128xf32, #tpu.memory_space<vmem>>, %arg10: memref<8x128xf32, #tpu.memory_space<vmem>>) attributes {dimension_semantics = [#tpu.dimension_semantics<parallel>], iteration_bounds = array<i64: 1>, scalar_prefetch = 0 : i64, scratch_operands = 0 : i64, tpu.core_type = #tpu.core_type<tc>, window_params = [{transform_indices = @transform_0, window_bounds = array<i64: 8, 64>}, {pipeline_mode = #tpu.pipeline_mode<synchronous>, transform_indices = @transform_1, window_bounds = array<i64: 64, 1024>}, {pipeline_mode = #tpu.pipeline_mode<synchronous>, transform_indices = @transform_2, window_bounds = array<i64: 1, 256>}, {pipeline_mode = #tpu.pipeline_mode<synchronous>, transform_indices = @transform_3, window_bounds = array<i64: 256, 512>}, {pipeline_mode = #tpu.pipeline_mode<synchronous>, transform_indices = @transform_4, window_bounds = array<i64: 1, 128>}, {pipeline_mode = #tpu.pipeline_mode<synchronous>, transform_indices = @transform_5, window_bounds = array<i64: 128, 256>}, {pipeline_mode = #tpu.pipeline_mode<synchronous>, transform_indices = @transform_6, window_bounds = array<i64: 1, 256>}, {pipeline_mode = #tpu.pipeline_mode<synchronous>, transform_indices = @transform_7, window_bounds = array<i64: 256, 128>}, {pipeline_mode = #tpu.pipeline_mode<synchronous>, transform_indices = @transform_8, window_bounds = array<i64: 1, 128>}, {transform_indices = @transform_9, window_bounds = array<i64: 8, 128>}]} {
    %c0 = arith.constant 0 : index
    %c0_0 = arith.constant 0 : index
    %0 = vector.load %arg1[%c0, %c0_0] : memref<8x64xf32, #tpu.memory_space<vmem>>, vector<8x64xf32>
    %c0_1 = arith.constant 0 : index
    %c0_2 = arith.constant 0 : index
    %1 = vector.load %arg2[%c0_1, %c0_2] : memref<64x1024xf32, #tpu.memory_space<vmem>>, vector<64x256xf32>
    %cst = arith.constant dense<0.000000e+00> : vector<8x256xf32>
    %2 = tpu.matmul %0, %1, %cst {dimension_numbers = #tpu.dot_dimension_numbers<[1], [0], [0], [1], [0, 0, 1, 1], [], []>} : vector<8x64xf32>, vector<64x256xf32>, vector<8x256xf32> -> vector<8x256xf32>
    %c0_3 = arith.constant 0 : index
    %c256 = arith.constant 256 : index
    %3 = vector.load %arg2[%c0_3, %c256] : memref<64x1024xf32, #tpu.memory_space<vmem>>, vector<64x256xf32>
    %cst_4 = arith.constant dense<0.000000e+00> : vector<8x256xf32>
    %4 = tpu.matmul %0, %3, %cst_4 {dimension_numbers = #tpu.dot_dimension_numbers<[1], [0], [0], [1], [0, 0, 1, 1], [], []>} : vector<8x64xf32>, vector<64x256xf32>, vector<8x256xf32> -> vector<8x256xf32>
    %5 = arith.maximumf %2, %4 : vector<8x256xf32>
    %c0_5 = arith.constant 0 : index
    %c512 = arith.constant 512 : index
    %6 = vector.load %arg2[%c0_5, %c512] : memref<64x1024xf32, #tpu.memory_space<vmem>>, vector<64x256xf32>
    %cst_6 = arith.constant dense<0.000000e+00> : vector<8x256xf32>
    %7 = tpu.matmul %0, %6, %cst_6 {dimension_numbers = #tpu.dot_dimension_numbers<[1], [0], [0], [1], [0, 0, 1, 1], [], []>} : vector<8x64xf32>, vector<64x256xf32>, vector<8x256xf32> -> vector<8x256xf32>
    %8 = arith.maximumf %5, %7 : vector<8x256xf32>
    %c0_7 = arith.constant 0 : index
    %c768 = arith.constant 768 : index
    %9 = vector.load %arg2[%c0_7, %c768] : memref<64x1024xf32, #tpu.memory_space<vmem>>, vector<64x256xf32>
    %cst_8 = arith.constant dense<0.000000e+00> : vector<8x256xf32>
    %10 = tpu.matmul %0, %9, %cst_8 {dimension_numbers = #tpu.dot_dimension_numbers<[1], [0], [0], [1], [0, 0, 1, 1], [], []>} : vector<8x64xf32>, vector<64x256xf32>, vector<8x256xf32> -> vector<8x256xf32>
    %11 = arith.maximumf %8, %10 : vector<8x256xf32>
    %c0_9 = arith.constant 0 : index
    %c0_10 = arith.constant 0 : index
    %12 = vector.load %arg3[%c0_9, %c0_10] : memref<1x256xf32, #tpu.memory_space<vmem>>, vector<1x256xf32>
    %13 = vector.broadcast %12 : vector<1x256xf32> to vector<8x256xf32>
    %14 = arith.addf %11, %13 : vector<8x256xf32>
    %cst_11 = arith.constant 0.000000e+00 : f32
    %15 = vector.broadcast %cst_11 : f32 to vector<8x256xf32>
    %16 = arith.maximumf %14, %15 : vector<8x256xf32>
    %c0_12 = arith.constant 0 : index
    %c0_13 = arith.constant 0 : index
    %17 = vector.load %arg4[%c0_12, %c0_13] : memref<256x512xf32, #tpu.memory_space<vmem>>, vector<256x256xf32>
    %cst_14 = arith.constant dense<0.000000e+00> : vector<8x256xf32>
    %18 = tpu.matmul %16, %17, %cst_14 {dimension_numbers = #tpu.dot_dimension_numbers<[1], [0], [0], [1], [0, 0, 1, 1], [], []>} : vector<8x256xf32>, vector<256x256xf32>, vector<8x256xf32> -> vector<8x256xf32>
    %c0_15 = arith.constant 0 : index
    %c256_16 = arith.constant 256 : index
    %19 = vector.load %arg4[%c0_15, %c256_16] : memref<256x512xf32, #tpu.memory_space<vmem>>, vector<256x256xf32>
    %cst_17 = arith.constant dense<0.000000e+00> : vector<8x256xf32>
    %20 = tpu.matmul %16, %19, %cst_17 {dimension_numbers = #tpu.dot_dimension_numbers<[1], [0], [0], [1], [0, 0, 1, 1], [], []>} : vector<8x256xf32>, vector<256x256xf32>, vector<8x256xf32> -> vector<8x256xf32>
    %21 = vector.extract_strided_slice %18 {offsets = [0, 0], sizes = [8, 128], strides = [1, 1]} : vector<8x256xf32> to vector<8x128xf32>
    %22 = vector.extract_strided_slice %18 {offsets = [0, 128], sizes = [8, 128], strides = [1, 1]} : vector<8x256xf32> to vector<8x128xf32>
    %23 = arith.maximumf %21, %22 : vector<8x128xf32>
    %24 = vector.extract_strided_slice %20 {offsets = [0, 0], sizes = [8, 128], strides = [1, 1]} : vector<8x256xf32> to vector<8x128xf32>
    %25 = vector.extract_strided_slice %20 {offsets = [0, 128], sizes = [8, 128], strides = [1, 1]} : vector<8x256xf32> to vector<8x128xf32>
    %26 = arith.maximumf %24, %25 : vector<8x128xf32>
    %27 = arith.maximumf %23, %26 : vector<8x128xf32>
    %c0_18 = arith.constant 0 : index
    %c0_19 = arith.constant 0 : index
    %28 = vector.load %arg5[%c0_18, %c0_19] : memref<1x128xf32, #tpu.memory_space<vmem>>, vector<1x128xf32>
    %29 = vector.broadcast %28 : vector<1x128xf32> to vector<8x128xf32>
    %30 = arith.addf %27, %29 : vector<8x128xf32>
    %cst_20 = arith.constant 0.000000e+00 : f32
    %31 = vector.broadcast %cst_20 : f32 to vector<8x128xf32>
    %32 = arith.maximumf %30, %31 : vector<8x128xf32>
    %c0_21 = arith.constant 0 : index
    %c0_22 = arith.constant 0 : index
    %33 = vector.load %arg6[%c0_21, %c0_22] : memref<128x256xf32, #tpu.memory_space<vmem>>, vector<128x256xf32>
    %cst_23 = arith.constant dense<0.000000e+00> : vector<8x256xf32>
    %34 = tpu.matmul %32, %33, %cst_23 {dimension_numbers = #tpu.dot_dimension_numbers<[1], [0], [0], [1], [0, 0, 1, 1], [], []>} : vector<8x128xf32>, vector<128x256xf32>, vector<8x256xf32> -> vector<8x256xf32>
    %c0_24 = arith.constant 0 : index
    %c0_25 = arith.constant 0 : index
    %35 = vector.load %arg7[%c0_24, %c0_25] : memref<1x256xf32, #tpu.memory_space<vmem>>, vector<1x256xf32>
    %36 = vector.broadcast %35 : vector<1x256xf32> to vector<8x256xf32>
    %37 = arith.addf %34, %36 : vector<8x256xf32>
    %cst_26 = arith.constant 0.000000e+00 : f32
    %38 = vector.broadcast %cst_26 : f32 to vector<8x256xf32>
    %39 = arith.maximumf %37, %38 : vector<8x256xf32>
    %c0_27 = arith.constant 0 : index
    %c0_28 = arith.constant 0 : index
    %40 = vector.load %arg8[%c0_27, %c0_28] : memref<256x128xf32, #tpu.memory_space<vmem>>, vector<256x128xf32>
    %cst_29 = arith.constant dense<0.000000e+00> : vector<8x128xf32>
    %41 = tpu.matmul %39, %40, %cst_29 {dimension_numbers = #tpu.dot_dimension_numbers<[1], [0], [0], [1], [0, 0, 1, 1], [], []>} : vector<8x256xf32>, vector<256x128xf32>, vector<8x128xf32> -> vector<8x128xf32>
    %c0_30 = arith.constant 0 : index
    %c0_31 = arith.constant 0 : index
    %42 = vector.load %arg9[%c0_30, %c0_31] : memref<1x128xf32, #tpu.memory_space<vmem>>, vector<1x128xf32>
    %43 = vector.broadcast %42 : vector<1x128xf32> to vector<8x128xf32>
    %44 = arith.addf %41, %43 : vector<8x128xf32>
    %c0_32 = arith.constant 0 : index
    %c0_33 = arith.constant 0 : index
    %45 = vector.load %arg10[%c0_32, %c0_33] : memref<8x128xf32, #tpu.memory_space<vmem>>, vector<8x128xf32>
    tpu.vector_store %arg10[%c0_32, %c0_33], %44 {strides = array<i32>} : memref<8x128xf32, #tpu.memory_space<vmem>>, vector<8x128xf32>,
    return
  }
  func.func @transform_0(%arg0: i32) -> (i32, i32) {
    %c0_i32 = arith.constant 0 : i32
    %c0_i32_0 = arith.constant 0 : i32
    return %arg0, %c0_i32 : i32, i32
  }
  func.func @transform_1(%arg0: i32) -> (i32, i32) {
    %c0_i32 = arith.constant 0 : i32
    %c0_i32_0 = arith.constant 0 : i32
    %c0_i32_1 = arith.constant 0 : i32
    return %c0_i32, %c0_i32_0 : i32, i32
  }
  func.func @transform_2(%arg0: i32) -> (i32, i32) {
    %c0_i32 = arith.constant 0 : i32
    %c0_i32_0 = arith.constant 0 : i32
    %c0_i32_1 = arith.constant 0 : i32
    return %c0_i32, %c0_i32_0 : i32, i32
  }
  func.func @transform_3(%arg0: i32) -> (i32, i32) {
    %c0_i32 = arith.constant 0 : i32
    %c0_i32_0 = arith.constant 0 : i32
    %c0_i32_1 = arith.constant 0 : i32
    return %c0_i32, %c0_i32_0 : i32, i32
  }
  func.func @transform_4(%arg0: i32) -> (i32, i32) {
    %c0_i32 = arith.constant 0 : i32
    %c0_i32_0 = arith.constant 0 : i32
    %c0_i32_1 = arith.constant 0 : i32
    return %c0_i32, %c0_i32_0 : i32, i32
  }
  func.func @transform_5(%arg0: i32) -> (i32, i32) {
    %c0_i32 = arith.constant 0 : i32
    %c0_i32_0 = arith.constant 0 : i32
    %c0_i32_1 = arith.constant 0 : i32
    return %c0_i32, %c0_i32_0 : i32, i32
  }
  func.func @transform_6(%arg0: i32) -> (i32, i32) {
    %c0_i32 = arith.constant 0 : i32
    %c0_i32_0 = arith.constant 0 : i32
    %c0_i32_1 = arith.constant 0 : i32
    return %c0_i32, %c0_i32_0 : i32, i32
  }
  func.func @transform_7(%arg0: i32) -> (i32, i32) {
    %c0_i32 = arith.constant 0 : i32
    %c0_i32_0 = arith.constant 0 : i32
    %c0_i32_1 = arith.constant 0 : i32
    return %c0_i32, %c0_i32_0 : i32, i32
  }
  func.func @transform_8(%arg0: i32) -> (i32, i32) {
    %c0_i32 = arith.constant 0 : i32
    %c0_i32_0 = arith.constant 0 : i32
    %c0_i32_1 = arith.constant 0 : i32
    return %c0_i32, %c0_i32_0 : i32, i32
  }
  func.func @transform_9(%arg0: i32) -> (i32, i32) {
    %c0_i32 = arith.constant 0 : i32
    %c0_i32_0 = arith.constant 0 : i32
    return %arg0, %c0_i32 : i32, i32
  }
}

</mosaic_0001>

<bundles_post_ra>
// kernel: simple_model_forward.1
= control target key start
LH: loop header
LB: loop body
LE: loop exit
PB: predicated region body
PF: predicated region fallthrough
CT: control target
= control target key end

     0   :  { %14 = vsyncpa [#allocation3], 0  ;;  %s1025_s0 = inlined_call_operand.vmem [shape: f32[8,64], index: 0, kind: input, shape index: {}]   ;;  %s1026_s1 = inlined_call_operand.hbm [shape: f32[64,1024], index: 1, kind: input, shape index: {}]   ;;  %s1027_s2 = inlined_call_operand.vmem [shape: f32[1,256], index: 2, kind: input, shape index: {}]   ;;  %s1028_s3 = inlined_call_operand.hbm [shape: f32[256,512], index: 3, kind: input, shape index: {}]   ;;  %s1029_s4 = inlined_call_operand.vmem [shape: f32[1,128], index: 4, kind: input, shape index: {}]   ;;  %s1030_s5 = inlined_call_operand.hbm [shape: f32[128,256], index: 5, kind: input, shape index: {}]   ;;  %s1031_s6 = inlined_call_operand.vmem [shape: f32[1,256], index: 6, kind: input, shape index: {}]   ;;  %s1032_s7 = inlined_call_operand.hbm [shape: f32[256,128], index: 7, kind: input, shape index: {}]   ;;  %s1033_s8 = inlined_call_operand.vmem [shape: f32[1,128], index: 8, kind: input, shape index: {}]   ;;  %s1034_s9 = inlined_call_operand.vmem [shape: f32[8,128], index: 9, kind: output, shape index: {}]  }
   0x1   :  { %15 = vsyncpa [#allocation5], 0  ;;  %s38_s11 = sshll.u32 %s1028_s3, 4  ;;  %s39_s11 = int_to_ptr.hbm [resolvable:$true] %s38_s11 }
   0x2   :  { %16 = vsyncpa [#allocation8], 0  ;;  %s925_s12 = smov [#allocation4]   ;;  %s23_s16 = sshll.u32 %s1026_s1, 4  ;;  %s24_s16 = int_to_ptr.hbm [resolvable:$true] %s23_s16 }
   0x3   :  { %s40_s13 = sshll.u32 %s925_s12, 4  ;;  %s926_s17 = smov 512   ;;  %s41_s13 = int_to_ptr.vmem [resolvable:$true] %s40_s13 }
   0x4   :  { %s927_s18 = smov 32   ;;  %s928_s19 = smov [#allocation2]  }
   0x5   :  { %46 = dma.hbm_to_vmem [thread:$0]  %s39_s11, 16384, %s41_s13, [#allocation5], %s926_s17, %s926_s17, %s927_s18  }
   0x6   :  { %s25_s20 = sshll.u32 %s928_s19, 4  ;;  %s929_s21 = smov 1024   ;;  %s26_s20 = int_to_ptr.vmem [resolvable:$true] %s25_s20 }
   0x7   :  { %s930_s22 = smov 64   ;;  %s53_s24 = sshll.u32 %s1030_s5, 4  ;;  %s54_s24 = int_to_ptr.hbm [resolvable:$true] %s53_s24 }
   0x8   :  { %31 = dma.hbm_to_vmem [thread:$0]  %s24_s16, 8192, %s26_s20, [#allocation3], %s929_s21, %s929_s21, %s930_s22  }
   0x9   :  { %s931_s25 = smov [#allocation6]   ;;  %s68_s28 = sshll.u32 %s1032_s7, 4  ;;  %s69_s28 = int_to_ptr.hbm [resolvable:$true] %s68_s28 }
   0xa   :  { %s55_s26 = sshll.u32 %s931_s25, 4  ;;  %s932_s29 = smov 256   ;;  %s56_s26 = int_to_ptr.vmem [resolvable:$true] %s55_s26 }
   0xb   :  { %s933_s30 = smov 16   ;;  %s934_s10 = smov [#allocation7]  }
   0xc   :  { %61 = dma.hbm_to_vmem [thread:$0]  %s54_s24, 4096, %s56_s26, [#allocation5], %s932_s29, %s932_s29, %s933_s30  }
   0xd   :  { %s70_s11 = sshll.u32 %s934_s10, 4  ;;  %s935_s12 = smov 128   ;;  %s71_s11 = int_to_ptr.vmem [resolvable:$true] %s70_s11 }
   0xe   :  { %s936_s13 = smov 8  }
   0xf   :  { %76 = dma.hbm_to_vmem [thread:$0]  %s69_s28, 4096, %s71_s11, [#allocation8], %s935_s12, %s935_s12, %s936_s13  }
  0x10   :  { %919 = dma.done.wait [#allocation3], 8192  }
  0x11   :  { %920 = vsyncadd [#allocation3], 4294959104 }
  0x12   :  { %921 = dma.done.wait [#allocation5], 20480  }
  0x13   :  { %922 = vsyncadd [#allocation5], 4294946816 }
  0x14   :  { %923 = dma.done.wait [#allocation8], 4096  }
  0x15   :  { %924 = vsyncadd [#allocation8], 4294963200  ;;  %v110_v0 = vld [vmem:[#allocation2 + $0x1c0] sm:$0xff]  ;;  %v111_v1 = vld [vmem:[#allocation2 + $0x1c8] sm:$0xff]  ;;  %vm112_vm0 = vcmask 523264  }
  0x16   :  { %v170_v2 = vld [vmem:[#allocation2 + $0x1d0] sm:$0xff]  ;;  %124 = vmatpush.msra.mxu0 %v110_v0  ;;  %144 = vmatpush.msra.mxu1 %v111_v1  ;;  %v171_v3 = vld [vmem:[#allocation2 + $0x1d8] sm:$0xff]  ;;  %v108_v4 = vld [vmem:[#allocation2 + $0x180] sm:$0xff] }
  0x17   :  { %v109_v5 = vld [vmem:[#allocation2 + $0x188] sm:$0xff]  ;;  %180 = vmatpush.msra.mxu2 %v170_v2  ;;  %200 = vmatpush.msra.mxu3 %v171_v3  ;;  %v168_v6 = vld [vmem:[#allocation2 + $0x190] sm:$0xff]  ;;  %v169_v7 = vld [vmem:[#allocation2 + $0x198] sm:$0xff] }
  0x18   :  { %v106_v8 = vld [vmem:[#allocation2 + $0x140] sm:$0xff]  ;;  %125 = vmatpush.msra.mxu0 %v108_v4  ;;  %145 = vmatpush.msra.mxu1 %v109_v5  ;;  %v107_v9 = vld [vmem:[#allocation2 + $0x148] sm:$0xff]  ;;  %v166_v10 = vld [vmem:[#allocation2 + $0x150] sm:$0xff] }
  0x19   :  { %v167_v11 = vld [vmem:[#allocation2 + $0x158] sm:$0xff]  ;;  %181 = vmatpush.msra.mxu2 %v168_v6  ;;  %201 = vmatpush.msra.mxu3 %v169_v7  ;;  %v104_v12 = vld [vmem:[#allocation2 + $0x100] sm:$0xff]  ;;  %v105_v13 = vld [vmem:[#allocation2 + $0x108] sm:$0xff] }
  0x1a   :  { %126 = vmatpush.msra.mxu0 %v106_v8  ;;  %146 = vmatpush.msra.mxu1 %v107_v9  ;;  %v164_v14 = vld [vmem:[#allocation2 + $0x110] sm:$0xff]  ;;  %v165_v15 = vld [vmem:[#allocation2 + $0x118] sm:$0xff]  ;;  %v102_v16 = vld [vmem:[#allocation2 + $0xc0] sm:$0xff] }
  0x1b   :  { %182 = vmatpush.msra.mxu2 %v166_v10  ;;  %202 = vmatpush.msra.mxu3 %v167_v11  ;;  %v103_v17 = vld [vmem:[#allocation2 + $0xc8] sm:$0xff]  ;;  %v162_v18 = vld [vmem:[#allocation2 + $0xd0] sm:$0xff]  ;;  %v163_v19 = vld [vmem:[#allocation2 + $0xd8] sm:$0xff] }
  0x1c   :  { %127 = vmatpush.msra.mxu0 %v104_v12  ;;  %147 = vmatpush.msra.mxu1 %v105_v13  ;;  %v100_v20 = vld [vmem:[#allocation2 + $0x80] sm:$0xff]  ;;  %v101_v21 = vld [vmem:[#allocation2 + $0x88] sm:$0xff]  ;;  %v160_v22 = vld [vmem:[#allocation2 + $0x90] sm:$0xff] }
  0x1d   :  { %183 = vmatpush.msra.mxu2 %v164_v14  ;;  %203 = vmatpush.msra.mxu3 %v165_v15  ;;  %v161_v23 = vld [vmem:[#allocation2 + $0x98] sm:$0xff]  ;;  %v98_v24 = vld [vmem:[#allocation2 + $0x40] sm:$0xff]  ;;  %v99_v25 = vld [vmem:[#allocation2 + $0x48] sm:$0xff] }
  0x1e   :  { %128 = vmatpush.msra.mxu0 %v102_v16  ;;  %148 = vmatpush.msra.mxu1 %v103_v17  ;;  %v158_v26 = vld [vmem:[#allocation2 + $0x50] sm:$0xff]  ;;  %v159_v27 = vld [vmem:[#allocation2 + $0x58] sm:$0xff]  ;;  %v96_v28 = vld [vmem:[#allocation2] sm:$0xff] }
  0x1f   :  { %184 = vmatpush.msra.mxu2 %v162_v18  ;;  %204 = vmatpush.msra.mxu3 %v163_v19  ;;  %v97_v29 = vld [vmem:[#allocation2 + $0x8] sm:$0xff]  ;;  %v156_v30 = vld [vmem:[#allocation2 + $0x10] sm:$0xff]  ;;  %v157_v31 = vld [vmem:[#allocation2 + $0x18] sm:$0xff] }
  0x20   :  { %129 = vmatpush.msra.mxu0 %v100_v20  ;;  %149 = vmatpush.msra.mxu1 %v101_v21  ;;  %v228_v32 = vld [vmem:[#allocation2 + $0x1e0] sm:$0xff]  ;;  %v229_v33 = vld [vmem:[#allocation2 + $0x1e8] sm:$0xff]  ;;  %v286_v34 = vld [vmem:[#allocation2 + $0x1f0] sm:$0xff] }
  0x21   :  { %185 = vmatpush.msra.mxu2 %v160_v22  ;;  %205 = vmatpush.msra.mxu3 %v161_v23  ;;  %v287_v35 = vld [vmem:[#allocation2 + $0x1f8] sm:$0xff]  ;;  %v226_v36 = vld [vmem:[#allocation2 + $0x1a0] sm:$0xff]  ;;  %v227_v37 = vld [vmem:[#allocation2 + $0x1a8] sm:$0xff] }
  0x22   :  { %130 = vmatpush.msra.mxu0 %v98_v24  ;;  %150 = vmatpush.msra.mxu1 %v99_v25  ;;  %v284_v38 = vld [vmem:[#allocation2 + $0x1b0] sm:$0xff]  ;;  %v285_v39 = vld [vmem:[#allocation2 + $0x1b8] sm:$0xff]  ;;  %v224_v40 = vld [vmem:[#allocation2 + $0x160] sm:$0xff] }
  0x23   :  { %186 = vmatpush.msra.mxu2 %v158_v26  ;;  %206 = vmatpush.msra.mxu3 %v159_v27  ;;  %v225_v41 = vld [vmem:[#allocation2 + $0x168] sm:$0xff]  ;;  %v282_v42 = vld [vmem:[#allocation2 + $0x170] sm:$0xff]  ;;  %v283_v43 = vld [vmem:[#allocation2 + $0x178] sm:$0xff] }
  0x24   :  { %131 = vmatpush.msra.mxu0 %v96_v28  ;;  %151 = vmatpush.msra.mxu1 %v97_v29  ;;  %v95_v44 = vld [vmem:[%s1025_s0] sm:$0xff]  ;;  %v223_v46 = vld [vmem:[#allocation2 + $0x128] sm:$0xff]  ;;  %v280_v47 = vld [vmem:[#allocation2 + $0x130] sm:$0xff] }
  0x25   :  { %187 = vmatpush.msra.mxu2 %v156_v30  ;;  %207 = vmatpush.msra.mxu3 %v157_v31  ;;  %v222_v45 = vld [vmem:[#allocation2 + $0x120] sm:$0xff]  ;;  %v281_v48 = vld [vmem:[#allocation2 + $0x138] sm:$0xff]  ;;  %v221_v50 = vld [vmem:[#allocation2 + $0xe8] sm:$0xff] }
  0x26   :  { %238 = vmatpush.msrb.mxu0 %v228_v32  ;;  %258 = vmatpush.msrb.mxu1 %v229_v33  ;;  %v220_v49 = vld [vmem:[#allocation2 + $0xe0] sm:$0xff]  ;;  %v278_v51 = vld [vmem:[#allocation2 + $0xf0] sm:$0xff]  ;;  %v279_v52 = vld [vmem:[#allocation2 + $0xf8] sm:$0xff] }
  0x27   :  { %296 = vmatpush.msrb.mxu2 %v286_v34  ;;  %316 = vmatpush.msrb.mxu3 %v287_v35  ;;  %v218_v53 = vld [vmem:[#allocation2 + $0xa0] sm:$0xff]  ;;  %v219_v54 = vld [vmem:[#allocation2 + $0xa8] sm:$0xff]  ;;  %v276_v55 = vld [vmem:[#allocation2 + $0xb0] sm:$0xff] }
  0x28   :  { %239 = vmatpush.msrb.mxu0 %v226_v36  ;;  %259 = vmatpush.msrb.mxu1 %v227_v37  ;;  %v277_v56 = vld [vmem:[#allocation2 + $0xb8] sm:$0xff]  ;;  %v216_v57 = vld [vmem:[#allocation2 + $0x60] sm:$0xff]  ;;  %v217_v58 = vld [vmem:[#allocation2 + $0x68] sm:$0xff] }
  0x29   :  { %297 = vmatpush.msrb.mxu2 %v284_v38  ;;  %317 = vmatpush.msrb.mxu3 %v285_v39  ;;  %v274_v59 = vld [vmem:[#allocation2 + $0x70] sm:$0xff]  ;;  %v275_v60 = vld [vmem:[#allocation2 + $0x78] sm:$0xff]  ;;  %v214_v61 = vld [vmem:[#allocation2 + $0x20] sm:$0xff] }
  0x2a   :  { %240 = vmatpush.msrb.mxu0 %v224_v40  ;;  %260 = vmatpush.msrb.mxu1 %v225_v41  ;;  %v215_v62 = vld [vmem:[#allocation2 + $0x28] sm:$0xff]  ;;  %v272_v63 = vld [vmem:[#allocation2 + $0x30] sm:$0xff]  ;;  %v273_v0 = vld [vmem:[#allocation2 + $0x38] sm:$0xff] }
  0x2b   :  { %298 = vmatpush.msrb.mxu2 %v282_v42  ;;  %318 = vmatpush.msrb.mxu3 %v283_v43  ;;  %v370_v1 = vld [vmem:[#allocation4 + $0x1e0] sm:$0xff]  ;;  %v371_v3 = vld [vmem:[#allocation4 + $0x1e8] sm:$0xff] }
  0x2c   :  { %803 = vmatmul.msk.f32.vlgmr.msra.gmra.mxu2 %vm112_vm0, %v95_v44  ;;  %804 = vmatmul.msk.f32.vlgmr.msra.gmra.mxu3 %vm112_vm0, %v95_v44  ;;  %v402_v2 = vld [vmem:[#allocation4 + $0x3e0] sm:$0xff]  ;;  %v403_v4 = vld [vmem:[#allocation4 + $0x3e8] sm:$0xff] }
  0x2d   :  { %241 = vmatpush.msrb.mxu0 %v222_v45  ;;  %261 = vmatpush.msrb.mxu1 %v223_v46  ;;  %v368_v5 = vld [vmem:[#allocation4 + $0x1c0] sm:$0xff]  ;;  %v369_v7 = vld [vmem:[#allocation4 + $0x1c8] sm:$0xff] }
  0x2e   :  { %299 = vmatpush.msrb.mxu2 %v280_v47  ;;  %319 = vmatpush.msrb.mxu3 %v281_v48  ;;  %v400_v6 = vld [vmem:[#allocation4 + $0x3c0] sm:$0xff]  ;;  %v401_v8 = vld [vmem:[#allocation4 + $0x3c8] sm:$0xff] }
  0x2f   :  { %801 = vmatmul.msk.f32.vlgmr.msra.gmra.mxu0 %vm112_vm0, %v95_v44  ;;  %802 = vmatmul.msk.f32.vlgmr.msra.gmra.mxu1 %vm112_vm0, %v95_v44  ;;  %v366_v9 = vld [vmem:[#allocation4 + $0x1a0] sm:$0xff]  ;;  %v367_v11 = vld [vmem:[#allocation4 + $0x1a8] sm:$0xff] }
  0x30   :  { %242 = vmatpush.msrb.mxu0 %v220_v49  ;;  %262 = vmatpush.msrb.mxu1 %v221_v50  ;;  %v398_v10 = vld [vmem:[#allocation4 + $0x3a0] sm:$0xff]  ;;  %v399_v12 = vld [vmem:[#allocation4 + $0x3a8] sm:$0xff] }
  0x31   :  { %300 = vmatpush.msrb.mxu2 %v278_v51  ;;  %320 = vmatpush.msrb.mxu3 %v279_v52  ;;  %v364_v13 = vld [vmem:[#allocation4 + $0x180] sm:$0xff]  ;;  %v365_v15 = vld [vmem:[#allocation4 + $0x188] sm:$0xff] }
  0x32   :  { %243 = vmatpush.msrb.mxu0 %v218_v53  ;;  %263 = vmatpush.msrb.mxu1 %v219_v54  ;;  %v396_v14 = vld [vmem:[#allocation4 + $0x380] sm:$0xff]  ;;  %v397_v16 = vld [vmem:[#allocation4 + $0x388] sm:$0xff] }
  0x33   :  { %301 = vmatpush.msrb.mxu2 %v276_v55  ;;  %321 = vmatpush.msrb.mxu3 %v277_v56  ;;  %v362_v17 = vld [vmem:[#allocation4 + $0x160] sm:$0xff]  ;;  %v363_v19 = vld [vmem:[#allocation4 + $0x168] sm:$0xff] }
  0x34   :  { %244 = vmatpush.msrb.mxu0 %v216_v57  ;;  %264 = vmatpush.msrb.mxu1 %v217_v58  ;;  %v394_v18 = vld [vmem:[#allocation4 + $0x360] sm:$0xff]  ;;  %v395_v20 = vld [vmem:[#allocation4 + $0x368] sm:$0xff] }
  0x35   :  { %302 = vmatpush.msrb.mxu2 %v274_v59  ;;  %322 = vmatpush.msrb.mxu3 %v275_v60  ;;  %v360_v21 = vld [vmem:[#allocation4 + $0x140] sm:$0xff]  ;;  %v361_v23 = vld [vmem:[#allocation4 + $0x148] sm:$0xff] }
  0x36   :  { %245 = vmatpush.msrb.mxu0 %v214_v61  ;;  %265 = vmatpush.msrb.mxu1 %v215_v62  ;;  %v392_v22 = vld [vmem:[#allocation4 + $0x340] sm:$0xff]  ;;  %v393_v24 = vld [vmem:[#allocation4 + $0x348] sm:$0xff] }
  0x37   :  { %303 = vmatpush.msrb.mxu2 %v272_v63  ;;  %323 = vmatpush.msrb.mxu3 %v273_v0  ;;  %v358_v25 = vld [vmem:[#allocation4 + $0x120] sm:$0xff]  ;;  %v359_v27 = vld [vmem:[#allocation4 + $0x128] sm:$0xff] }
  0x38   :  { %805 = vmatmul.msk.f32.vlgmr.msrb.gmra.mxu0 %vm112_vm0, %v95_v44  ;;  %806 = vmatmul.msk.f32.vlgmr.msrb.gmra.mxu1 %vm112_vm0, %v95_v44  ;;  %v390_v26 = vld [vmem:[#allocation4 + $0x320] sm:$0xff]  ;;  %v391_v28 = vld [vmem:[#allocation4 + $0x328] sm:$0xff] }
  0x39   :  { %807 = vmatmul.msk.f32.vlgmr.msrb.gmra.mxu2 %vm112_vm0, %v95_v44  ;;  %808 = vmatmul.msk.f32.vlgmr.msrb.gmra.mxu3 %vm112_vm0, %v95_v44  ;;  %v356_v29 = vld [vmem:[#allocation4 + $0x100] sm:$0xff]  ;;  %v357_v31 = vld [vmem:[#allocation4 + $0x108] sm:$0xff] }
  0x3a   :  { %404 = vmatpush.msra.mxu0 %v370_v1  ;;  %424 = vmatpush.msra.mxu1 %v402_v2  ;;  %v388_v30 = vld [vmem:[#allocation4 + $0x300] sm:$0xff]  ;;  %v389_v32 = vld [vmem:[#allocation4 + $0x308] sm:$0xff]  ;;  %v514_v1 = vld [vmem:[#allocation4 + $0x1f0] sm:$0xff] }
  0x3b   :  { %444 = vmatpush.msra.mxu2 %v371_v3  ;;  %464 = vmatpush.msra.mxu3 %v403_v4  ;;  %v354_v33 = vld [vmem:[#allocation4 + $0xe0] sm:$0xff]  ;;  %v355_v35 = vld [vmem:[#allocation4 + $0xe8] sm:$0xff]  ;;  %v546_v2 = vld [vmem:[#allocation4 + $0x3f0] sm:$0xff] }
  0x3c   :  { %405 = vmatpush.msra.mxu0 %v368_v5  ;;  %425 = vmatpush.msra.mxu1 %v400_v6  ;;  %v386_v34 = vld [vmem:[#allocation4 + $0x2e0] sm:$0xff]  ;;  %v387_v36 = vld [vmem:[#allocation4 + $0x2e8] sm:$0xff]  ;;  %v515_v3 = vld [vmem:[#allocation4 + $0x1f8] sm:$0xff] }
  0x3d   :  { %445 = vmatpush.msra.mxu2 %v369_v7  ;;  %465 = vmatpush.msra.mxu3 %v401_v8  ;;  %v352_v37 = vld [vmem:[#allocation4 + $0xc0] sm:$0xff]  ;;  %v353_v39 = vld [vmem:[#allocation4 + $0xc8] sm:$0xff]  ;;  %v547_v4 = vld [vmem:[#allocation4 + $0x3f8] sm:$0xff] }
  0x3e   :  { %406 = vmatpush.msra.mxu0 %v366_v9  ;;  %426 = vmatpush.msra.mxu1 %v398_v10  ;;  %v384_v38 = vld [vmem:[#allocation4 + $0x2c0] sm:$0xff]  ;;  %v385_v40 = vld [vmem:[#allocation4 + $0x2c8] sm:$0xff]  ;;  %v512_v5 = vld [vmem:[#allocation4 + $0x1d0] sm:$0xff] }
  0x3f   :  { %446 = vmatpush.msra.mxu2 %v367_v11  ;;  %466 = vmatpush.msra.mxu3 %v399_v12  ;;  %v350_v41 = vld [vmem:[#allocation4 + $0xa0] sm:$0xff]  ;;  %v351_v43 = vld [vmem:[#allocation4 + $0xa8] sm:$0xff]  ;;  %v544_v6 = vld [vmem:[#allocation4 + $0x3d0] sm:$0xff] }
  0x40   :  { %407 = vmatpush.msra.mxu0 %v364_v13  ;;  %427 = vmatpush.msra.mxu1 %v396_v14  ;;  %v382_v42 = vld [vmem:[#allocation4 + $0x2a0] sm:$0xff]  ;;  %v383_v44 = vld [vmem:[#allocation4 + $0x2a8] sm:$0xff]  ;;  %v513_v7 = vld [vmem:[#allocation4 + $0x1d8] sm:$0xff] }
  0x41   :  { %447 = vmatpush.msra.mxu2 %v365_v15  ;;  %467 = vmatpush.msra.mxu3 %v397_v16  ;;  %v348_v45 = vld [vmem:[#allocation4 + $0x80] sm:$0xff]  ;;  %v349_v47 = vld [vmem:[#allocation4 + $0x88] sm:$0xff]  ;;  %v545_v8 = vld [vmem:[#allocation4 + $0x3d8] sm:$0xff] }
  0x42   :  { %408 = vmatpush.msra.mxu0 %v362_v17  ;;  %428 = vmatpush.msra.mxu1 %v394_v18  ;;  %v380_v46 = vld [vmem:[#allocation4 + $0x280] sm:$0xff]  ;;  %v381_v48 = vld [vmem:[#allocation4 + $0x288] sm:$0xff]  ;;  %v510_v9 = vld [vmem:[#allocation4 + $0x1b0] sm:$0xff] }
  0x43   :  { %448 = vmatpush.msra.mxu2 %v363_v19  ;;  %468 = vmatpush.msra.mxu3 %v395_v20  ;;  %v346_v49 = vld [vmem:[#allocation4 + $0x60] sm:$0xff]  ;;  %v347_v51 = vld [vmem:[#allocation4 + $0x68] sm:$0xff]  ;;  %v542_v10 = vld [vmem:[#allocation4 + $0x3b0] sm:$0xff] }
  0x44   :  { %409 = vmatpush.msra.mxu0 %v360_v21  ;;  %429 = vmatpush.msra.mxu1 %v392_v22  ;;  %v378_v50 = vld [vmem:[#allocation4 + $0x260] sm:$0xff]  ;;  %v379_v52 = vld [vmem:[#allocation4 + $0x268] sm:$0xff]  ;;  %v511_v11 = vld [vmem:[#allocation4 + $0x1b8] sm:$0xff] }
  0x45   :  { %449 = vmatpush.msra.mxu2 %v361_v23  ;;  %469 = vmatpush.msra.mxu3 %v393_v24  ;;  %v344_v53 = vld [vmem:[#allocation4 + $0x40] sm:$0xff]  ;;  %v345_v55 = vld [vmem:[#allocation4 + $0x48] sm:$0xff]  ;;  %v543_v12 = vld [vmem:[#allocation4 + $0x3b8] sm:$0xff] }
  0x46   :  { %410 = vmatpush.msra.mxu0 %v358_v25  ;;  %430 = vmatpush.msra.mxu1 %v390_v26  ;;  %v376_v54 = vld [vmem:[#allocation4 + $0x240] sm:$0xff]  ;;  %v377_v56 = vld [vmem:[#allocation4 + $0x248] sm:$0xff]  ;;  %v508_v13 = vld [vmem:[#allocation4 + $0x190] sm:$0xff] }
  0x47   :  { %450 = vmatpush.msra.mxu2 %v359_v27  ;;  %470 = vmatpush.msra.mxu3 %v391_v28  ;;  %v342_v57 = vld [vmem:[#allocation4 + $0x20] sm:$0xff]  ;;  %v343_v59 = vld [vmem:[#allocation4 + $0x28] sm:$0xff]  ;;  %v540_v14 = vld [vmem:[#allocation4 + $0x390] sm:$0xff] }
  0x48   :  { %411 = vmatpush.msra.mxu0 %v356_v29  ;;  %431 = vmatpush.msra.mxu1 %v388_v30  ;;  %v374_v58 = vld [vmem:[#allocation4 + $0x220] sm:$0xff]  ;;  %v375_v60 = vld [vmem:[#allocation4 + $0x228] sm:$0xff]  ;;  %v509_v15 = vld [vmem:[#allocation4 + $0x198] sm:$0xff] }
  0x49   :  { %451 = vmatpush.msra.mxu2 %v357_v31  ;;  %471 = vmatpush.msra.mxu3 %v389_v32  ;;  %v340_v61 = vld [vmem:[#allocation4] sm:$0xff]  ;;  %v341_v63 = vld [vmem:[#allocation4 + $0x8] sm:$0xff]  ;;  %v541_v16 = vld [vmem:[#allocation4 + $0x398] sm:$0xff] }
  0x4a   :  { %412 = vmatpush.msra.mxu0 %v354_v33  ;;  %432 = vmatpush.msra.mxu1 %v386_v34  ;;  %v372_v62 = vld [vmem:[#allocation4 + $0x200] sm:$0xff]  ;;  %v373_v0 = vld [vmem:[#allocation4 + $0x208] sm:$0xff]  ;;  %v506_v17 = vld [vmem:[#allocation4 + $0x170] sm:$0xff] }
  0x4b   :  { %452 = vmatpush.msra.mxu2 %v355_v35  ;;  %472 = vmatpush.msra.mxu3 %v387_v36  ;;  %v538_v18 = vld [vmem:[#allocation4 + $0x370] sm:$0xff]  ;;  %v507_v19 = vld [vmem:[#allocation4 + $0x178] sm:$0xff] }
  0x4c   :  { %413 = vmatpush.msra.mxu0 %v352_v37  ;;  %433 = vmatpush.msra.mxu1 %v384_v38  ;;  %v539_v20 = vld [vmem:[#allocation4 + $0x378] sm:$0xff]  ;;  %v504_v21 = vld [vmem:[#allocation4 + $0x150] sm:$0xff] }
  0x4d   :  { %453 = vmatpush.msra.mxu2 %v353_v39  ;;  %473 = vmatpush.msra.mxu3 %v385_v40  ;;  %v536_v22 = vld [vmem:[#allocation4 + $0x350] sm:$0xff]  ;;  %v505_v23 = vld [vmem:[#allocation4 + $0x158] sm:$0xff] }
  0x4e   :  { %414 = vmatpush.msra.mxu0 %v350_v41  ;;  %434 = vmatpush.msra.mxu1 %v382_v42  ;;  %v537_v24 = vld [vmem:[#allocation4 + $0x358] sm:$0xff]  ;;  %v502_v25 = vld [vmem:[#allocation4 + $0x130] sm:$0xff] }
  0x4f   :  { %454 = vmatpush.msra.mxu2 %v351_v43  ;;  %474 = vmatpush.msra.mxu3 %v383_v44  ;;  %v534_v26 = vld [vmem:[#allocation4 + $0x330] sm:$0xff]  ;;  %v503_v27 = vld [vmem:[#allocation4 + $0x138] sm:$0xff] }
  0x50   :  { %415 = vmatpush.msra.mxu0 %v348_v45  ;;  %435 = vmatpush.msra.mxu1 %v380_v46  ;;  %v535_v28 = vld [vmem:[#allocation4 + $0x338] sm:$0xff]  ;;  %v500_v29 = vld [vmem:[#allocation4 + $0x110] sm:$0xff] }
  0x51   :  { %455 = vmatpush.msra.mxu2 %v349_v47  ;;  %475 = vmatpush.msra.mxu3 %v381_v48  ;;  %v532_v30 = vld [vmem:[#allocation4 + $0x310] sm:$0xff]  ;;  %v501_v31 = vld [vmem:[#allocation4 + $0x118] sm:$0xff] }
  0x52   :  { %416 = vmatpush.msra.mxu0 %v346_v49  ;;  %436 = vmatpush.msra.mxu1 %v378_v50  ;;  %v533_v32 = vld [vmem:[#allocation4 + $0x318] sm:$0xff]  ;;  %v498_v33 = vld [vmem:[#allocation4 + $0xf0] sm:$0xff] }
  0x53   :  { %456 = vmatpush.msra.mxu2 %v347_v51  ;;  %476 = vmatpush.msra.mxu3 %v379_v52  ;;  %v530_v34 = vld [vmem:[#allocation4 + $0x2f0] sm:$0xff]  ;;  %v499_v35 = vld [vmem:[#allocation4 + $0xf8] sm:$0xff] }
  0x54   :  { %417 = vmatpush.msra.mxu0 %v344_v53  ;;  %437 = vmatpush.msra.mxu1 %v376_v54  ;;  %v531_v36 = vld [vmem:[#allocation4 + $0x2f8] sm:$0xff]  ;;  %v496_v37 = vld [vmem:[#allocation4 + $0xd0] sm:$0xff] }
  0x55   :  { %457 = vmatpush.msra.mxu2 %v345_v55  ;;  %477 = vmatpush.msra.mxu3 %v377_v56  ;;  %v528_v38 = vld [vmem:[#allocation4 + $0x2d0] sm:$0xff]  ;;  %v497_v39 = vld [vmem:[#allocation4 + $0xd8] sm:$0xff] }
  0x56   :  { %418 = vmatpush.msra.mxu0 %v342_v57  ;;  %438 = vmatpush.msra.mxu1 %v374_v58  ;;  %v529_v40 = vld [vmem:[#allocation4 + $0x2d8] sm:$0xff]  ;;  %v494_v41 = vld [vmem:[#allocation4 + $0xb0] sm:$0xff] }
  0x57   :  { %458 = vmatpush.msra.mxu2 %v343_v59  ;;  %478 = vmatpush.msra.mxu3 %v375_v60  ;;  %v526_v42 = vld [vmem:[#allocation4 + $0x2b0] sm:$0xff]  ;;  %v495_v43 = vld [vmem:[#allocation4 + $0xb8] sm:$0xff] }
  0x58   :  { %419 = vmatpush.msra.mxu0 %v340_v61  ;;  %439 = vmatpush.msra.mxu1 %v372_v62  ;;  %v527_v44 = vld [vmem:[#allocation4 + $0x2b8] sm:$0xff]  ;;  %v492_v45 = vld [vmem:[#allocation4 + $0x90] sm:$0xff] }
  0x59   :  { %459 = vmatpush.msra.mxu2 %v341_v63  ;;  %479 = vmatpush.msra.mxu3 %v373_v0  ;;  %v524_v46 = vld [vmem:[#allocation4 + $0x290] sm:$0xff]  ;;  %v493_v47 = vld [vmem:[#allocation4 + $0x98] sm:$0xff] }
  0x5a   :  { %548 = vmatpush.msrb.mxu0 %v514_v1  ;;  %568 = vmatpush.msrb.mxu1 %v546_v2  ;;  %v525_v48 = vld [vmem:[#allocation4 + $0x298] sm:$0xff]  ;;  %v490_v49 = vld [vmem:[#allocation4 + $0x70] sm:$0xff] }
  0x5b   :  { %588 = vmatpush.msrb.mxu2 %v515_v3  ;;  %608 = vmatpush.msrb.mxu3 %v547_v4  ;;  %v522_v50 = vld [vmem:[#allocation4 + $0x270] sm:$0xff]  ;;  %v491_v51 = vld [vmem:[#allocation4 + $0x78] sm:$0xff] }
  0x5c   :  { %549 = vmatpush.msrb.mxu0 %v512_v5  ;;  %569 = vmatpush.msrb.mxu1 %v544_v6  ;;  %v523_v52 = vld [vmem:[#allocation4 + $0x278] sm:$0xff]  ;;  %v488_v53 = vld [vmem:[#allocation4 + $0x50] sm:$0xff] }
  0x5d   :  { %589 = vmatpush.msrb.mxu2 %v513_v7  ;;  %609 = vmatpush.msrb.mxu3 %v545_v8  ;;  %v520_v54 = vld [vmem:[#allocation4 + $0x250] sm:$0xff]  ;;  %v489_v55 = vld [vmem:[#allocation4 + $0x58] sm:$0xff]  ;;  %v330_v7 = vld [vmem:[%s1027_s2] sm:$0x3] }
  0x5e   :  { %550 = vmatpush.msrb.mxu0 %v510_v9  ;;  %570 = vmatpush.msrb.mxu1 %v542_v10  ;;  %v521_v56 = vld [vmem:[#allocation4 + $0x258] sm:$0xff]  ;;  %v486_v57 = vld [vmem:[#allocation4 + $0x30] sm:$0xff] }
  0x5f   :  { %590 = vmatpush.msrb.mxu2 %v511_v11  ;;  %610 = vmatpush.msrb.mxu3 %v543_v12  ;;  %v518_v58 = vld [vmem:[#allocation4 + $0x230] sm:$0xff]  ;;  %v487_v59 = vld [vmem:[#allocation4 + $0x38] sm:$0xff]  ;;  %v332_v12 = vperm.slane %v330_v7, 0 }
  0x60   :  { %551 = vmatpush.msrb.mxu0 %v508_v13  ;;  %571 = vmatpush.msrb.mxu1 %v540_v14  ;;  %v519_v60 = vld [vmem:[#allocation4 + $0x238] sm:$0xff]  ;;  %v484_v61 = vld [vmem:[#allocation4 + $0x10] sm:$0xff]  ;;  %v333_v13 = vperm.slane %v330_v7, 1  ;;  %v741_v7 = vld [vmem:[#allocation7 + $0xc0] sm:$0xff] }
  0x61   :  { %591 = vmatpush.msrb.mxu2 %v509_v15  ;;  %611 = vmatpush.msrb.mxu3 %v541_v16  ;;  %v516_v62 = vld [vmem:[#allocation4 + $0x210] sm:$0xff]  ;;  %v485_v63 = vld [vmem:[#allocation4 + $0x18] sm:$0xff] }
  0x62   :  { %552 = vmatpush.msrb.mxu0 %v506_v17  ;;  %572 = vmatpush.msrb.mxu1 %v538_v18  ;;  %v517_v0 = vld [vmem:[#allocation4 + $0x218] sm:$0xff] }
  0x63   :  { %592 = vmatpush.msrb.mxu2 %v507_v19  ;;  %612 = vmatpush.msrb.mxu3 %v539_v20 }
  0x64   :  { %553 = vmatpush.msrb.mxu0 %v504_v21  ;;  %573 = vmatpush.msrb.mxu1 %v536_v22  ;;  %v667_v22 = vld [vmem:[#allocation6 + $0xf0] sm:$0xff] }
  0x65   :  { %593 = vmatpush.msrb.mxu2 %v505_v23  ;;  %613 = vmatpush.msrb.mxu3 %v537_v24  ;;  %v668_v23 = vld [vmem:[#allocation6 + $0xf8] sm:$0xff]  ;;  %v665_v24 = vld [vmem:[#allocation6 + $0xe0] sm:$0xff] }
  0x66   :  { %554 = vmatpush.msrb.mxu0 %v502_v25  ;;  %574 = vmatpush.msrb.mxu1 %v534_v26  ;;  %v666_v25 = vld [vmem:[#allocation6 + $0xe8] sm:$0xff]  ;;  %v663_v26 = vld [vmem:[#allocation6 + $0xd0] sm:$0xff] }
  0x67   :  { %594 = vmatpush.msrb.mxu2 %v503_v27  ;;  %614 = vmatpush.msrb.mxu3 %v535_v28  ;;  %v664_v27 = vld [vmem:[#allocation6 + $0xd8] sm:$0xff]  ;;  %v661_v28 = vld [vmem:[#allocation6 + $0xc0] sm:$0xff] }
  0x68   :  { %555 = vmatpush.msrb.mxu0 %v500_v29  ;;  %575 = vmatpush.msrb.mxu1 %v532_v30  ;;  %v662_v29 = vld [vmem:[#allocation6 + $0xc8] sm:$0xff]  ;;  %v659_v30 = vld [vmem:[#allocation6 + $0xb0] sm:$0xff] }
  0x69   :  { %595 = vmatpush.msrb.mxu2 %v501_v31  ;;  %615 = vmatpush.msrb.mxu3 %v533_v32  ;;  %v660_v31 = vld [vmem:[#allocation6 + $0xb8] sm:$0xff]  ;;  %v657_v32 = vld [vmem:[#allocation6 + $0xa0] sm:$0xff] }
  0x6a   :  { %556 = vmatpush.msrb.mxu0 %v498_v33  ;;  %576 = vmatpush.msrb.mxu1 %v530_v34  ;;  %v658_v33 = vld [vmem:[#allocation6 + $0xa8] sm:$0xff]  ;;  %v655_v34 = vld [vmem:[#allocation6 + $0x90] sm:$0xff] }
  0x6b   :  { %596 = vmatpush.msrb.mxu2 %v499_v35  ;;  %616 = vmatpush.msrb.mxu3 %v531_v36  ;;  %v656_v35 = vld [vmem:[#allocation6 + $0x98] sm:$0xff]  ;;  %v653_v36 = vld [vmem:[#allocation6 + $0x80] sm:$0xff] }
  0x6c   :  { %557 = vmatpush.msrb.mxu0 %v496_v37  ;;  %577 = vmatpush.msrb.mxu1 %v528_v38  ;;  %v654_v37 = vld [vmem:[#allocation6 + $0x88] sm:$0xff]  ;;  %v651_v38 = vld [vmem:[#allocation6 + $0x70] sm:$0xff] }
  0x6d   :  { %597 = vmatpush.msrb.mxu2 %v497_v39  ;;  %617 = vmatpush.msrb.mxu3 %v529_v40  ;;  %v652_v39 = vld [vmem:[#allocation6 + $0x78] sm:$0xff]  ;;  %v649_v40 = vld [vmem:[#allocation6 + $0x60] sm:$0xff] }
  0x6e   :  { %558 = vmatpush.msrb.mxu0 %v494_v41  ;;  %578 = vmatpush.msrb.mxu1 %v526_v42  ;;  %v650_v41 = vld [vmem:[#allocation6 + $0x68] sm:$0xff]  ;;  %v647_v42 = vld [vmem:[#allocation6 + $0x50] sm:$0xff] }
  0x6f   :  { %598 = vmatpush.msrb.mxu2 %v495_v43  ;;  %618 = vmatpush.msrb.mxu3 %v527_v44  ;;  %v648_v43 = vld [vmem:[#allocation6 + $0x58] sm:$0xff]  ;;  %v645_v44 = vld [vmem:[#allocation6 + $0x40] sm:$0xff] }
  0x70   :  { %559 = vmatpush.msrb.mxu0 %v492_v45  ;;  %579 = vmatpush.msrb.mxu1 %v524_v46  ;;  %v646_v45 = vld [vmem:[#allocation6 + $0x48] sm:$0xff]  ;;  %v643_v46 = vld [vmem:[#allocation6 + $0x30] sm:$0xff] }
  0x71   :  { %599 = vmatpush.msrb.mxu2 %v493_v47  ;;  %619 = vmatpush.msrb.mxu3 %v525_v48  ;;  %v644_v47 = vld [vmem:[#allocation6 + $0x38] sm:$0xff]  ;;  %v641_v48 = vld [vmem:[#allocation6 + $0x20] sm:$0xff] }
  0x72   :  { %560 = vmatpush.msrb.mxu0 %v490_v49  ;;  %580 = vmatpush.msrb.mxu1 %v522_v50  ;;  %v642_v49 = vld [vmem:[#allocation6 + $0x28] sm:$0xff]  ;;  %v639_v50 = vld [vmem:[#allocation6 + $0x10] sm:$0xff] }
  0x73   :  { %600 = vmatpush.msrb.mxu2 %v491_v51  ;;  %620 = vmatpush.msrb.mxu3 %v523_v52  ;;  %v640_v51 = vld [vmem:[#allocation6 + $0x18] sm:$0xff]  ;;  %v637_v52 = vld [vmem:[#allocation6] sm:$0xff] }
  0x74   :  { %561 = vmatpush.msrb.mxu0 %v488_v53  ;;  %581 = vmatpush.msrb.mxu1 %v520_v54  ;;  %v638_v53 = vld [vmem:[#allocation6 + $0x8] sm:$0xff]  ;;  %v732_v54 = vld [vmem:[#allocation7 + $0x78] sm:$0xff] }
  0x75   :  { %601 = vmatpush.msrb.mxu2 %v489_v55  ;;  %621 = vmatpush.msrb.mxu3 %v521_v56  ;;  %v748_v55 = vld [vmem:[#allocation7 + $0xf8] sm:$0xff]  ;;  %v731_v56 = vld [vmem:[#allocation7 + $0x70] sm:$0xff] }
  0x76   :  { %562 = vmatpush.msrb.mxu0 %v486_v57  ;;  %582 = vmatpush.msrb.mxu1 %v518_v58  ;;  %v747_v57 = vld [vmem:[#allocation7 + $0xf0] sm:$0xff]  ;;  %v730_v58 = vld [vmem:[#allocation7 + $0x68] sm:$0xff] }
  0x77   :  { %602 = vmatpush.msrb.mxu2 %v487_v59  ;;  %622 = vmatpush.msrb.mxu3 %v519_v60  ;;  %v746_v59 = vld [vmem:[#allocation7 + $0xe8] sm:$0xff]  ;;  %v729_v60 = vld [vmem:[#allocation7 + $0x60] sm:$0xff] }
  0x78   :  { %563 = vmatpush.msrb.mxu0 %v484_v61  ;;  %583 = vmatpush.msrb.mxu1 %v516_v62  ;;  %v745_v61 = vld [vmem:[#allocation7 + $0xe0] sm:$0xff]  ;;  %v728_v62 = vld [vmem:[#allocation7 + $0x58] sm:$0xff] }
  0x79   :  { %603 = vmatpush.msrb.mxu2 %v485_v63  ;;  %623 = vmatpush.msrb.mxu3 %v517_v0  ;;  %v744_v63 = vld [vmem:[#allocation7 + $0xd8] sm:$0xff]  ;;  %v727_v0 = vld [vmem:[#allocation7 + $0x50] sm:$0xff] }
  0xac   :  { %v133_v1 = vpop.f32.mrf.mxu0  ;;  %v153_v2 = vpop.f32.mrf.mxu1 }
  0xaf   :  { %v189_v3 = vpop.f32.mrf.mxu2  ;;  %v209_v4 = vpop.f32.mrf.mxu3 }
  0xb0   :  { %v212_v8 = vmax.f32 %v133_v1, %v189_v3  ;;  %v213_v9 = vmax.f32 %v153_v2, %v209_v4  ;;  %v743_v1 = vld [vmem:[#allocation7 + $0xd0] sm:$0xff]  ;;  %v726_v4 = vld [vmem:[#allocation7 + $0x48] sm:$0xff] }
  0xb5   :  { %v247_v5 = vpop.f32.mrf.mxu0  ;;  %v267_v6 = vpop.f32.mrf.mxu1 }
  0xb6   :  { %v270_v10 = vmax.f32 %v212_v8, %v247_v5  ;;  %v271_v11 = vmax.f32 %v213_v9, %v267_v6  ;;  %v742_v5 = vld [vmem:[#allocation7 + $0xc8] sm:$0xff]  ;;  %v725_v6 = vld [vmem:[#allocation7 + $0x40] sm:$0xff] }
  0xbc   :  { %v305_v14 = vpop.f32.mrf.mxu2  ;;  %v325_v15 = vpop.f32.mrf.mxu3 }
  0xbd   :  { %v328_v16 = vmax.f32 %v270_v10, %v305_v14  ;;  %v329_v17 = vmax.f32 %v271_v11, %v325_v15  ;;  %v724_v10 = vld [vmem:[#allocation7 + $0x38] sm:$0xff]  ;;  %v722_v14 = vld [vmem:[#allocation7 + $0x28] sm:$0xff] }
  0xbe   :  { %v740_v11 = vld [vmem:[#allocation7 + $0xb8] sm:$0xff]  ;;  %v738_v15 = vld [vmem:[#allocation7 + $0xa8] sm:$0xff] }
  0xbf   :  { %v336_v18 = vadd.f32 %v332_v12, %v328_v16  ;;  %v337_v19 = vadd.f32 %v333_v13, %v329_v17  ;;  %v723_v12 = vld [vmem:[#allocation7 + $0x30] sm:$0xff] }
  0xc0   :  { %v739_v13 = vld [vmem:[#allocation7 + $0xb0] sm:$0xff] }
  0xc1   :  { %v338_v20 = vmax.f32 %v336_v18, 0.0  ;;  %v339_v21 = vmax.f32 %v337_v19, 0.0  ;;  %v721_v19 = vld [vmem:[#allocation7 + $0x20] sm:$0xff] }
  0xc3   :  { %420 = vmatmul.f32.vlgmr.msra.gmra.mxu0 %v338_v20  ;;  %440 = vmatmul.f32.vlgmr.msra.gmra.mxu1 %v339_v21 }
  0xc4   :  { %460 = vmatmul.f32.vlgmr.msra.gmra.mxu2 %v338_v20  ;;  %480 = vmatmul.f32.vlgmr.msra.gmra.mxu3 %v339_v21 }
  0xc5   :  { %675 = vmatpush.msra.mxu0 %v667_v22  ;;  %695 = vmatpush.msra.mxu1 %v668_v23 }
  0xc6   :  { %753 = vmatpush.msra.mxu2 %v732_v54  ;;  %773 = vmatpush.msra.mxu3 %v748_v55 }
  0xc7   :  { %676 = vmatpush.msra.mxu0 %v665_v24  ;;  %696 = vmatpush.msra.mxu1 %v666_v25 }
  0xc8   :  { %754 = vmatpush.msra.mxu2 %v731_v56  ;;  %774 = vmatpush.msra.mxu3 %v747_v57 }
  0xc9   :  { %677 = vmatpush.msra.mxu0 %v663_v26  ;;  %697 = vmatpush.msra.mxu1 %v664_v27  ;;  %v720_v26 = vld [vmem:[#allocation7 + $0x18] sm:$0xff] }
  0xca   :  { %755 = vmatpush.msra.mxu2 %v730_v58  ;;  %775 = vmatpush.msra.mxu3 %v746_v59  ;;  %v736_v27 = vld [vmem:[#allocation7 + $0x98] sm:$0xff] }
  0xcb   :  { %564 = vmatmul.f32.vlgmr.msrb.gmra.mxu0 %v338_v20  ;;  %584 = vmatmul.f32.vlgmr.msrb.gmra.mxu1 %v339_v21 }
  0xcc   :  { %604 = vmatmul.f32.vlgmr.msrb.gmra.mxu2 %v338_v20  ;;  %624 = vmatmul.f32.vlgmr.msrb.gmra.mxu3 %v339_v21  ;;  %v737_v20 = vld [vmem:[#allocation7 + $0xa0] sm:$0xff] }
  0xcd   :  { %678 = vmatpush.msra.mxu0 %v661_v28  ;;  %698 = vmatpush.msra.mxu1 %v662_v29 }
  0xce   :  { %756 = vmatpush.msra.mxu2 %v729_v60  ;;  %776 = vmatpush.msra.mxu3 %v745_v61 }
  0xcf   :  { %679 = vmatpush.msra.mxu0 %v659_v30  ;;  %699 = vmatpush.msra.mxu1 %v660_v31  ;;  %v821_v30 = vld [vmem:[%s1029_s4] ss:$0 sm:$0xff] }
  0xd0   :  { %757 = vmatpush.msra.mxu2 %v728_v62  ;;  %777 = vmatpush.msra.mxu3 %v744_v63 }
  0xd1   :  { %680 = vmatpush.msra.mxu0 %v657_v32  ;;  %700 = vmatpush.msra.mxu1 %v658_v33 }
  0xd2   :  { %758 = vmatpush.msra.mxu2 %v727_v0  ;;  %778 = vmatpush.msra.mxu3 %v743_v1 }
  0xd3   :  { %681 = vmatpush.msra.mxu0 %v655_v34  ;;  %701 = vmatpush.msra.mxu1 %v656_v35  ;;  %v719_v34 = vld [vmem:[#allocation7 + $0x10] sm:$0xff] }
  0xd4   :  { %759 = vmatpush.msra.mxu2 %v726_v4  ;;  %779 = vmatpush.msra.mxu3 %v742_v5  ;;  %v735_v35 = vld [vmem:[#allocation7 + $0x90] sm:$0xff] }
  0xd5   :  { %682 = vmatpush.msra.mxu0 %v653_v36  ;;  %702 = vmatpush.msra.mxu1 %v654_v37  ;;  %v718_v36 = vld [vmem:[#allocation7 + $0x8] sm:$0xff] }
  0xd6   :  { %760 = vmatpush.msra.mxu2 %v725_v6  ;;  %780 = vmatpush.msra.mxu3 %v741_v7  ;;  %v734_v37 = vld [vmem:[#allocation7 + $0x88] sm:$0xff] }
  0xd7   :  { %683 = vmatpush.msra.mxu0 %v651_v38  ;;  %703 = vmatpush.msra.mxu1 %v652_v39  ;;  %v717_v38 = vld [vmem:[#allocation7] sm:$0xff] }
  0xd8   :  { %761 = vmatpush.msra.mxu2 %v724_v10  ;;  %781 = vmatpush.msra.mxu3 %v740_v11  ;;  %v733_v39 = vld [vmem:[#allocation7 + $0x80] sm:$0xff] }
  0xd9   :  { %684 = vmatpush.msra.mxu0 %v649_v40  ;;  %704 = vmatpush.msra.mxu1 %v650_v41  ;;  %v669_v40 = vld [vmem:[%s1031_s6] sm:$0x3] }
  0xda   :  { %762 = vmatpush.msra.mxu2 %v723_v12  ;;  %782 = vmatpush.msra.mxu3 %v739_v13  ;;  %v671_v41 = vperm.slane %v669_v40, 0 }
  0xdb   :  { %685 = vmatpush.msra.mxu0 %v647_v42  ;;  %705 = vmatpush.msra.mxu1 %v648_v43  ;;  %v672_v42 = vperm.slane %v669_v40, 1 }
  0xdc   :  { %763 = vmatpush.msra.mxu2 %v722_v14  ;;  %783 = vmatpush.msra.mxu3 %v738_v15 }
  0xdd   :  { %686 = vmatpush.msra.mxu0 %v645_v44  ;;  %706 = vmatpush.msra.mxu1 %v646_v45 }
  0xde   :  { %764 = vmatpush.msra.mxu2 %v721_v19  ;;  %784 = vmatpush.msra.mxu3 %v737_v20 }
  0xdf   :  { %687 = vmatpush.msra.mxu0 %v643_v46  ;;  %707 = vmatpush.msra.mxu1 %v644_v47 }
  0xe0   :  { %765 = vmatpush.msra.mxu2 %v720_v26  ;;  %785 = vmatpush.msra.mxu3 %v736_v27 }
  0xe1   :  { %688 = vmatpush.msra.mxu0 %v641_v48  ;;  %708 = vmatpush.msra.mxu1 %v642_v49  ;;  %v822_v49 = vld [vmem:[%s1033_s8] ss:$0 sm:$0xff] }
  0xe2   :  { %766 = vmatpush.msra.mxu2 %v719_v34  ;;  %786 = vmatpush.msra.mxu3 %v735_v35 }
  0xe3   :  { %689 = vmatpush.msra.mxu0 %v639_v50  ;;  %709 = vmatpush.msra.mxu1 %v640_v51 }
  0xe4   :  { %767 = vmatpush.msra.mxu2 %v718_v36  ;;  %787 = vmatpush.msra.mxu3 %v734_v37 }
  0xe5   :  { %690 = vmatpush.msra.mxu0 %v637_v52  ;;  %710 = vmatpush.msra.mxu1 %v638_v53 }
  0xe6   :  { %768 = vmatpush.msra.mxu2 %v717_v38  ;;  %788 = vmatpush.msra.mxu3 %v733_v39 }
 0x140   :  { %v421_v2 = vpop.f32.mrf.mxu0  ;;  %v441_v3 = vpop.f32.mrf.mxu1 }
 0x141   :  { %v442_v23 = vadd.f32 %v441_v3, %v421_v2 }
 0x147   :  { %v461_v8 = vpop.f32.mrf.mxu2  ;;  %v481_v9 = vpop.f32.mrf.mxu3 }
 0x148   :  { %v565_v16 = vpop.f32.mrf.mxu0  ;;  %v585_v17 = vpop.f32.mrf.mxu1  ;;  %v482_v18 = vadd.f32 %v481_v9, %v461_v8 }
 0x149   :  { %v586_v24 = vadd.f32 %v585_v17, %v565_v16 }
 0x14a   :  { %v628_v28 = vmax.f32 %v442_v23, %v482_v18 }
 0x14f   :  { %v605_v21 = vpop.f32.mrf.mxu2  ;;  %v625_v22 = vpop.f32.mrf.mxu3 }
 0x150   :  { %v626_v25 = vadd.f32 %v625_v22, %v605_v21 }
 0x152   :  { %v629_v29 = vmax.f32 %v586_v24, %v626_v25 }
 0x154   :  { %v630_v31 = vmax.f32 %v628_v28, %v629_v29 }
 0x156   :  { %v635_v32 = vadd.f32 %v821_v30, %v630_v31 }
 0x158   :  { %v636_v33 = vmax.f32 %v635_v32, 0.0 }
 0x15a   :  { %691 = vmatmul.f32.vlgmr.msra.gmra.mxu0 %v636_v33  ;;  %711 = vmatmul.f32.vlgmr.msra.gmra.mxu1 %v636_v33 }
 0x1d7   :  { %v692_v43 = vpop.f32.mrf.mxu0  ;;  %v712_v44 = vpop.f32.mrf.mxu1 }
 0x1d8   :  { %v693_v45 = vadd.f32 %v692_v43, %v671_v41  ;;  %v713_v46 = vadd.f32 %v712_v44, %v672_v42 }
 0x1da   :  { %v715_v47 = vmax.f32 %v693_v45, 0.0  ;;  %v716_v48 = vmax.f32 %v713_v46, 0.0 }
 0x1dc   :  { %769 = vmatmul.f32.vlgmr.msra.gmra.mxu2 %v715_v47  ;;  %789 = vmatmul.f32.vlgmr.msra.gmra.mxu3 %v716_v48 }
 0x25f   :  { %v770_v50 = vpop.f32.mrf.mxu2  ;;  %v790_v52 = vpop.f32.mrf.mxu3 }
 0x260   :  { %v771_v51 = vadd.f32 %v822_v49, %v770_v50 }
 0x262   :  { %v791_v53 = vadd.f32 %v790_v52, %v771_v51 }
 0x264   :  { %793 = vst [vmem:[%s1034_s9] sm:$0xff] %v791_v53 }
 0x265   :  { %798 = vsyncpa [#allocation3], 1 }
 0x266   :  { %799 = vsyncpa [#allocation5], 1 }
 0x267   :  { %800 = vsyncpa [#allocation8], 1 }

</bundles_post_ra>
